<compile_context>
chip_gen: v6e
topology: v6e:2x2x1
jax: 0.10.0
libtpu: 0.0.40
codegen_flags: <defaults>
</compile_context>

<pallas_src>
import functools

import jax
import jax.numpy as jnp
import numpy as np
from jax.experimental import pallas as pl
from jax.experimental.pallas import tpu as pltpu

_LANE = 128


# --------------------------------------------------------------------------- hw query
def _device_kind():
    try:
        return jax.devices()[0].device_kind.lower()
    except Exception:
        return ""


def _num_tensorcores(kind):
    # 2-TC parts (v7x; megacore v4/v5p).  v5e / v6e are single-TC.
    if "v7" in kind or "v4" in kind or "v5p" in kind:
        return 2
    return 1


def _vmem_budget_bytes(kind):
    """Usable per-TensorCore VMEM budget (~80% of capacity)."""
    cap = 64 << 20  # conservative default: v7x per-TC VMEM
    try:
        info = pltpu.get_tpu_info()
        cap = int(getattr(info, "vmem_capacity_bytes", cap))
    except Exception:
        pass
    if "v7" in kind:
        # v7x has 64 MiB per TensorCore; never let a per-chip (128 MiB) figure leak in.
        cap = min(cap, 64 << 20)
    return (cap * 4) // 5


def _largest_divisor_leq(n, limit):
    limit = max(1, min(n, int(limit)))
    for d in range(limit, 0, -1):
        if n % d == 0:
            return d
    return 1


# ----------------------------------------------------------------------------- kernels
def _fused_se_kernel(x_ref, w1_ref, b1_ref, w2_ref, b2_ref, o_ref, *, inv_hw):
    # x_ref:  (TB, C, HW)    TB batch elements, true (unpadded) spatial length
    # w1_ref: (C, Cr)        fc1 weight, transposed to (in, out), f32
    # b1_ref: (1, Cr)
    # w2_ref: (Cr, C)        fc2 weight, transposed to (in, out), f32
    # b2_ref: (1, C)
    # o_ref:  (TB, C, HW)
    x = x_ref[...]

    # Squeeze: global average pool over the spatial dim, f32 accumulation.
    pooled = jnp.sum(x, axis=-1, dtype=jnp.float32) * inv_hw          # (TB, C)

    # Excitation: Linear -> ReLU -> Linear -> Sigmoid, all in f32 (tiny vs. HBM traffic).
    h = jnp.dot(pooled, w1_ref[...], preferred_element_type=jnp.float32) + b1_ref[...]
    h = jnp.maximum(h, 0.0)                                           # (TB, Cr)
    y = jnp.dot(h, w2_ref[...], preferred_element_type=jnp.float32) + b2_ref[...]
    y = jax.nn.sigmoid(y)                                             # (TB, C)

    # Scale: per-channel gate, multiply in the input dtype (no full-tile f32 round-trip).
    o_ref[...] = x * y.astype(x.dtype)[:, :, None]


def _rescale_kernel(y_ref, x_ref, o_ref):
    # y_ref: (1, C, 1) gate,  x_ref/o_ref: (1, C, THW).  The (1, C, 1) gate layout is
    # kept (instead of a lane-dense (1, C)) for robust lowering; the gate is tiny.
    x = x_ref[...]
    o_ref[...] = x * y_ref[...].astype(x.dtype)


# ----------------------------------------------------------------------------- wrapper
def se_layer(x, w1, b1, w2, b2, *, force_fallback=False):
    """x: (B, C, H, W). w1: (C//r, C), b1: (C//r,), w2: (C, C//r), b2: (C,)."""
    B, C, H, W = x.shape
    HW = H * W
    Cr = w1.shape[0]
    itemsize = jnp.dtype(x.dtype).itemsize

    kind = _device_kind()
    n_cores = _num_tensorcores(kind)
    budget = _vmem_budget_bytes(kind)

    # No spatial padding: the full HW is a legal block dim (exempt from 128-divisibility).
    x_flat = x.reshape(B, C, HW)

    w1_t = w1.T.astype(jnp.float32)            # (C, Cr)
    w2_t = w2.T.astype(jnp.float32)            # (Cr, C)
    b1_2d = b1.reshape(1, Cr).astype(jnp.float32)
    b2_2d = b2.reshape(1, C).astype(jnp.float32)

    # VMEM accounting: weights/biases resident (assume double-buffered), then 4 block
    # buffers per batch element (in + out, each double-buffered), plus a possible f32
    # temp if the pooling upcast of a sub-f32 tile is materialized by Mosaic.
    weight_bytes = 4 * (C * Cr + Cr + Cr * C + C)
    avail = max(0, budget - 2 * weight_bytes)

    per_batch = 4 * C * HW * itemsize
    if itemsize < 4:
        per_batch += C * HW * 4

    fits_fused = (per_batch <= avail) and not force_fallback

    if fits_fused:
        # -------- fused one-pass path: x read from HBM exactly once --------
        tb_cap = max(1, avail // per_batch)
        if n_cores > 1 and B >= n_cores:
            tb_cap = min(tb_cap, B // n_cores)   # keep grid >= n_cores only on 2-TC parts
        TB = _largest_divisor_leq(B, tb_cap)
        grid = (B // TB,)

        cost = pl.CostEstimate(
            flops=3 * B * C * HW + 4 * B * C * Cr,
            transcendentals=B * C,
            bytes_accessed=2 * B * C * HW * itemsize + 2 * weight_bytes,
        )

        out_flat = pl.pallas_call(
            functools.partial(_fused_se_kernel, inv_hw=1.0 / HW),
            out_shape=jax.ShapeDtypeStruct((B, C, HW), x.dtype),
            grid_spec=pltpu.PrefetchScalarGridSpec(
                num_scalar_prefetch=0,
                grid=grid,
                in_specs=[
                    pl.BlockSpec((TB, C, HW), lambda b: (b, 0, 0)),
                    pl.BlockSpec((C, Cr), lambda b: (0, 0)),
                    pl.BlockSpec((1, Cr), lambda b: (0, 0)),
                    pl.BlockSpec((Cr, C), lambda b: (0, 0)),
                    pl.BlockSpec((1, C), lambda b: (0, 0)),
                ],
                out_specs=pl.BlockSpec((TB, C, HW), lambda b: (b, 0, 0)),
            ),
            compiler_params=pltpu.CompilerParams(
                dimension_semantics=("parallel",),
                vmem_limit_bytes=budget,
            ),
            cost_estimate=cost,
        )(x_flat, w1_t, b1_2d, w2_t, b2_2d)
    else:
        # -------- two-pass fallback: (C, HW) slab too big for VMEM --------
        # Gate is tiny: pool directly from the unpadded x (f32) + excitation in plain
        # JAX (one extra read of x), then a tiled, unpadded elementwise rescale kernel.
        # Total traffic: 2 reads + 1 write of x.
        pooled = jnp.mean(x, axis=(2, 3), dtype=jnp.float32)                 # (B, C)
        h = jnp.maximum(pooled @ w1_t + b1_2d, 0.0)
        gate = jax.nn.sigmoid(h @ w2_t + b2_2d).reshape(B, C, 1)             # (B, C, 1) f32

        max_lanes = max(1, avail // (4 * C * itemsize))
        if HW <= max_lanes or max_lanes < _LANE:
            THW = HW                                   # full-dim block (exempt from 128 rule)
        else:
            THW = min((max_lanes // _LANE) * _LANE, HW)  # multiple of 128; last block masked
        grid = (B, pl.cdiv(HW, THW))

        cost = pl.CostEstimate(
            flops=B * C * HW,
            transcendentals=0,
            bytes_accessed=2 * B * C * HW * itemsize + 4 * B * C,
        )

        out_flat = pl.pallas_call(
            _rescale_kernel,
            out_shape=jax.ShapeDtypeStruct((B, C, HW), x.dtype),
            grid_spec=pltpu.PrefetchScalarGridSpec(
                num_scalar_prefetch=0,
                grid=grid,
                in_specs=[
                    pl.BlockSpec((1, C, 1), lambda b, s: (b, 0, 0)),
                    pl.BlockSpec((1, C, THW), lambda b, s: (b, 0, s)),
                ],
                out_specs=pl.BlockSpec((1, C, THW), lambda b, s: (b, 0, s)),
            ),
            compiler_params=pltpu.CompilerParams(
                dimension_semantics=("parallel", "parallel"),
                vmem_limit_bytes=budget,
            ),
            cost_estimate=cost,
        )(gate, x_flat)

    return out_flat.reshape(B, C, H, W)


def se_layer_ref(x, w1, b1, w2, b2):
    """Pure-JAX reference matching the PyTorch forward."""
    pooled = jnp.mean(x, axis=(2, 3))
    h = jnp.maximum(pooled @ w1.T + b1, 0.0)
    y = jax.nn.sigmoid(h @ w2.T + b2)
    return x * y[:, :, None, None]


if __name__ == "__main__":
    reduction = 8
    key = jax.random.PRNGKey(0)

    def make_inputs(key, B, C, H, W, dtype):
        Cr = C // reduction
        kx, k1, k2, k3, k4 = jax.random.split(key, 5)
        x = jax.random.normal(kx, (B, C, H, W), dtype=jnp.float32).astype(dtype)
        w1 = jax.random.uniform(k1, (Cr, C), minval=-1.0 / np.sqrt(C), maxval=1.0 / np.sqrt(C))
        b1 = jax.random.uniform(k2, (Cr,), minval=-1.0 / np.sqrt(C), maxval=1.0 / np.sqrt(C))
        w2 = jax.random.uniform(k3, (C, Cr), minval=-1.0 / np.sqrt(Cr), maxval=1.0 / np.sqrt(Cr))
        b2 = jax.random.uniform(k4, (C,), minval=-1.0 / np.sqrt(Cr), maxval=1.0 / np.sqrt(Cr))
        return x, w1, b1, w2, b2

    # (B, C, H, W, dtype, force_fallback)
    configs = [
        (4, 16, 16, 16, jnp.float32, False),   # fused, TB > 1, lane-aligned HW
        (2, 16, 14, 14, jnp.float32, False),   # fused, non-128-aligned HW (masked last vreg)
        (2, 16, 14, 14, jnp.bfloat16, False),  # fused, bf16 input (looser tolerance)
        (2, 16, 12, 12, jnp.float32, True),    # two-pass fallback path exercised explicitly
    ]

    for (B, C, H, W, dtype, ff) in configs:
        key, sub = jax.random.split(key)
        x, w1, b1, w2, b2 = make_inputs(sub, B, C, H, W, dtype)

        out = jax.block_until_ready(se_layer(x, w1, b1, w2, b2, force_fallback=ff))

        if dtype == jnp.bfloat16:
            ref = se_layer_ref(x.astype(jnp.float32), w1, b1, w2, b2)
            np.testing.assert_allclose(
                np.asarray(out.astype(jnp.float32)), np.asarray(ref), rtol=2e-2, atol=2e-2)
        else:
            ref = jax.block_until_ready(se_layer_ref(x, w1, b1, w2, b2))
            np.testing.assert_allclose(np.asarray(out), np.asarray(ref), rtol=1e-5, atol=1e-5)

    print("KERNEL_OK")
</pallas_src>

<mosaic_0001>
module attributes {stable_mosaic.version = 11 : i64} {
  func.func @_fused_se_kernel(%arg0: i32, %arg1: memref<4x16x256xf32, #tpu.memory_space<vmem>>, %arg2: memref<16x2xf32, #tpu.memory_space<vmem>>, %arg3: memref<1x2xf32, #tpu.memory_space<vmem>>, %arg4: memref<2x16xf32, #tpu.memory_space<vmem>>, %arg5: memref<1x16xf32, #tpu.memory_space<vmem>>, %arg6: memref<4x16x256xf32, #tpu.memory_space<vmem>>) attributes {dimension_semantics = [#tpu.dimension_semantics<parallel>], iteration_bounds = array<i64: 1>, scalar_prefetch = 0 : i64, scratch_operands = 0 : i64, tpu.core_type = #tpu.core_type<tc>, window_params = [{transform_indices = @transform_0, window_bounds = array<i64: 4, 16, 256>}, {pipeline_mode = #tpu.pipeline_mode<synchronous>, transform_indices = @transform_1, window_bounds = array<i64: 16, 2>}, {pipeline_mode = #tpu.pipeline_mode<synchronous>, transform_indices = @transform_2, window_bounds = array<i64: 1, 2>}, {pipeline_mode = #tpu.pipeline_mode<synchronous>, transform_indices = @transform_3, window_bounds = array<i64: 2, 16>}, {pipeline_mode = #tpu.pipeline_mode<synchronous>, transform_indices = @transform_4, window_bounds = array<i64: 1, 16>}, {transform_indices = @transform_5, window_bounds = array<i64: 4, 16, 256>}]} {
    %c0 = arith.constant 0 : index
    %c0_0 = arith.constant 0 : index
    %c0_1 = arith.constant 0 : index
    %0 = vector.load %arg1[%c0, %c0_0, %c0_1] : memref<4x16x256xf32, #tpu.memory_space<vmem>>, vector<4x16x256xf32>
    %cst = arith.constant dense<0.000000e+00> : vector<4x16xf32>
    %1 = vector.multi_reduction <add>, %0, %cst [2] : vector<4x16x256xf32> to vector<4x16xf32>
    %cst_2 = arith.constant 3.906250e-03 : f32
    %2 = vector.broadcast %cst_2 : f32 to vector<4x16xf32>
    %3 = arith.mulf %1, %2 : vector<4x16xf32>
    %c0_3 = arith.constant 0 : index
    %c0_4 = arith.constant 0 : index
    %4 = vector.load %arg2[%c0_3, %c0_4] : memref<16x2xf32, #tpu.memory_space<vmem>>, vector<16x2xf32>
    %cst_5 = arith.constant dense<0.000000e+00> : vector<4x2xf32>
    %5 = tpu.matmul %3, %4, %cst_5 {dimension_numbers = #tpu.dot_dimension_numbers<[1], [0], [0], [1], [0, 0, 1, 1], [], []>} : vector<4x16xf32>, vector<16x2xf32>, vector<4x2xf32> -> vector<4x2xf32>
    %c0_6 = arith.constant 0 : index
    %c0_7 = arith.constant 0 : index
    %6 = vector.load %arg3[%c0_6, %c0_7] : memref<1x2xf32, #tpu.memory_space<vmem>>, vector<1x2xf32>
    %7 = vector.broadcast %6 : vector<1x2xf32> to vector<4x2xf32>
    %8 = arith.addf %5, %7 : vector<4x2xf32>
    %cst_8 = arith.constant 0.000000e+00 : f32
    %9 = vector.broadcast %cst_8 : f32 to vector<4x2xf32>
    %10 = arith.maximumf %8, %9 : vector<4x2xf32>
    %c0_9 = arith.constant 0 : index
    %c0_10 = arith.constant 0 : index
    %11 = vector.load %arg4[%c0_9, %c0_10] : memref<2x16xf32, #tpu.memory_space<vmem>>, vector<2x16xf32>
    %cst_11 = arith.constant dense<0.000000e+00> : vector<4x16xf32>
    %12 = tpu.matmul %10, %11, %cst_11 {dimension_numbers = #tpu.dot_dimension_numbers<[1], [0], [0], [1], [0, 0, 1, 1], [], []>} : vector<4x2xf32>, vector<2x16xf32>, vector<4x16xf32> -> vector<4x16xf32>
    %c0_12 = arith.constant 0 : index
    %c0_13 = arith.constant 0 : index
    %13 = vector.load %arg5[%c0_12, %c0_13] : memref<1x16xf32, #tpu.memory_space<vmem>>, vector<1x16xf32>
    %14 = vector.broadcast %13 : vector<1x16xf32> to vector<4x16xf32>
    %15 = arith.addf %12, %14 : vector<4x16xf32>
    %16 = arith.negf %15 : vector<4x16xf32>
    %17 = math.exp %16 : vector<4x16xf32>
    %cst_14 = arith.constant 1.000000e+00 : f32
    %18 = vector.broadcast %cst_14 : f32 to vector<4x16xf32>
    %19 = arith.addf %18, %17 : vector<4x16xf32>
    %20 = arith.divf %18, %19 : vector<4x16xf32>
    %21 = vector.shape_cast %20 : vector<4x16xf32> to vector<4x16x1xf32>
    %22 = vector.broadcast %21 : vector<4x16x1xf32> to vector<4x16x256xf32>
    %23 = arith.mulf %0, %22 : vector<4x16x256xf32>
    %c0_15 = arith.constant 0 : index
    %c0_16 = arith.constant 0 : index
    %c0_17 = arith.constant 0 : index
    %24 = vector.load %arg6[%c0_15, %c0_16, %c0_17] : memref<4x16x256xf32, #tpu.memory_space<vmem>>, vector<4x16x256xf32>
    tpu.vector_store %arg6[%c0_15, %c0_16, %c0_17], %23 {strides = array<i32>} : memref<4x16x256xf32, #tpu.memory_space<vmem>>, vector<4x16x256xf32>,
    return
  }
  func.func @transform_0(%arg0: i32) -> (i32, i32, i32) {
    %c0_i32 = arith.constant 0 : i32
    %c0_i32_0 = arith.constant 0 : i32
    %c0_i32_1 = arith.constant 0 : i32
    return %arg0, %c0_i32, %c0_i32_0 : i32, i32, i32
  }
  func.func @transform_1(%arg0: i32) -> (i32, i32) {
    %c0_i32 = arith.constant 0 : i32
    %c0_i32_0 = arith.constant 0 : i32
    %c0_i32_1 = arith.constant 0 : i32
    return %c0_i32, %c0_i32_0 : i32, i32
  }
  func.func @transform_2(%arg0: i32) -> (i32, i32) {
    %c0_i32 = arith.constant 0 : i32
    %c0_i32_0 = arith.constant 0 : i32
    %c0_i32_1 = arith.constant 0 : i32
    return %c0_i32, %c0_i32_0 : i32, i32
  }
  func.func @transform_3(%arg0: i32) -> (i32, i32) {
    %c0_i32 = arith.constant 0 : i32
    %c0_i32_0 = arith.constant 0 : i32
    %c0_i32_1 = arith.constant 0 : i32
    return %c0_i32, %c0_i32_0 : i32, i32
  }
  func.func @transform_4(%arg0: i32) -> (i32, i32) {
    %c0_i32 = arith.constant 0 : i32
    %c0_i32_0 = arith.constant 0 : i32
    %c0_i32_1 = arith.constant 0 : i32
    return %c0_i32, %c0_i32_0 : i32, i32
  }
  func.func @transform_5(%arg0: i32) -> (i32, i32, i32) {
    %c0_i32 = arith.constant 0 : i32
    %c0_i32_0 = arith.constant 0 : i32
    %c0_i32_1 = arith.constant 0 : i32
    return %arg0, %c0_i32, %c0_i32_0 : i32, i32, i32
  }
}

</mosaic_0001>

<bundles_post_ra>
// kernel: tpu_custom_call.1
= control target key start
LH: loop header
LB: loop body
LE: loop exit
PB: predicated region body
PF: predicated region fallthrough
CT: control target
= control target key end

     0   :  { %10 = vsyncpa [#allocation3], 0  ;;  %s621_s0 = inlined_call_operand.hbm [shape: f32[4,16,256], index: 0, kind: input, shape index: {}]   ;;  %s622_s1 = inlined_call_operand.vmem [shape: f32[16,2], index: 1, kind: input, shape index: {}]   ;;  %s623_s2 = inlined_call_operand.vmem [shape: f32[1,2], index: 2, kind: input, shape index: {}]   ;;  %s624_s3 = inlined_call_operand.vmem [shape: f32[2,16], index: 3, kind: input, shape index: {}]   ;;  %s625_s4 = inlined_call_operand.vmem [shape: f32[1,16], index: 4, kind: input, shape index: {}]   ;;  %s626_s5 = inlined_call_operand.hbm [shape: f32[4,16,256], index: 5, kind: output, shape index: {}]  }
   0x1   :  { %11 = vsyncpa [#allocation4], 0  ;;  %s482_s18 = smov [#allocation2]  }
   0x2   :  { %s17_s19 = sshll.u32 %s482_s18, 4  ;;  %s18_s19 = int_to_ptr.vmem [resolvable:$true] %s17_s19 }
   0x3   :  { %s446_s20 = scalar_lea.vmem %s18_s19, 2048  ;;  %p451_p1 = scmp.lt.s32.totalorder %s18_s19, %s18_s19 }
   0x4   :  { %p447_p0 = scmp.ne.s32.totalorder %s18_s19, %s446_s20  ;;  %p452_p2 = scmp.lt.s32.totalorder %s446_s20, %s446_s20 }
   0x6   :  { %p453_p3 = por %p452_p2, %p451_p1 }
   0x8   :  { %p454_p4 = pnand %p453_p3, %p447_p0 }
   0xa   :  { %457 = shalt.err (!%p454_p4)
}
   0xb   :  { %s483_s21 = smov 256   ;;  %s484_s22 = smov 16  }
   0xc   :  { %23 = dma.hbm_to_vmem [thread:$0]  %s621_s0, 2048, %s18_s19, [#allocation3], %s483_s21, %s483_s21, %s484_s22  }
   0xd   :  { %478 = dma.done.wait [#allocation3], 2048  }
   0xe   :  { %479 = vsyncadd [#allocation3], 4294965248  ;;  %v524_v0 = vld [vmem:[#allocation2 + $0x20] sm:$0xff]  ;;  %v526_v1 = vld [vmem:[#allocation2 + $0x28] sm:$0xff]  ;;  %v485_v24 = vmov 0.0   ;;  %vm486_vm0 = vmmov 0   ;;  %v100_v27 = vlaneseq }
   0xf   :  { %v528_v2 = vld [vmem:[#allocation2] sm:$0xff]  ;;  %v57_v3 = vadd.f32 %v526_v1, %v524_v0  ;;  %v532_v4 = vld [vmem:[#allocation2 + $0x8] sm:$0xff]  ;;  %v534_v5 = vld [vmem:[#allocation2 + $0x30] sm:$0xff]  ;;  %416 = vmatprep.subr.mxu0 %v485_v24  ;;  %423 = vmatprep.subr.mxu1 %v485_v24  ;;  %vm111_vm1 = vcmask 130112   ;;  %vm140_vm2 = vcmask 1041409   ;;  %vm142_vm3 = vcmask 1042434  }
  0x10   :  { %v536_v6 = vld [vmem:[#allocation2 + $0x38] sm:$0xff]  ;;  %v51_v7 = vadd.f32 %v532_v4, %v528_v2  ;;  %v540_v8 = vld [vmem:[#allocation2 + $0x10] sm:$0xff]  ;;  %v552_v14 = vld [vmem:[#allocation2 + $0x40] sm:$0xff]  ;;  %420 = vmatprep.mubr.msk.f32.mxu0 %vm486_vm0, %v485_v24  ;;  %425 = vmatprep.mubr.msk.f32.mxu1 %vm486_vm0, %v485_v24  ;;  %v101_v28 = vand.u32 127, %v100_v27  ;;  %v578_v32 = vshrl.u32 %v100_v27, 7  ;;  %vm144_vm4 = vcmask 1043459  }
  0x11   :  { %v542_v9 = vld [vmem:[#allocation2 + $0x18] sm:$0xff]  ;;  %58 = vadd.xlane.f32.xlu1 %v57_v3  ;;  %v60_v10 = vadd.f32 %v536_v6, %v534_v5  ;;  %v548_v12 = vld [vmem:[#allocation2 + $0x50] sm:$0xff]  ;;  %v554_v15 = vld [vmem:[#allocation2 + $0x48] sm:$0xff]  ;;  %vm146_vm5 = vcmask 130048   ;;  %vm232_vm6 = vcmask 1041408   ;;  %vm228_vm7 = vcmask 15360  }
  0x12   :  { %52 = vadd.xlane.f32.xlu0 %v51_v7  ;;  %v54_v11 = vadd.f32 %v542_v9, %v540_v8  ;;  %v550_v13 = vld [vmem:[#allocation2 + $0x58] sm:$0xff]  ;;  %v63_v17 = vadd.f32 %v554_v15, %v552_v14  ;;  %v560_v18 = vld [vmem:[#allocation2 + $0x70] sm:$0xff]  ;;  %v564_v20 = vld [vmem:[#allocation2 + $0x60] sm:$0xff]  ;;  %v106_v31 = vadd.s32 4294967288, %v101_v28  ;;  %v104_v38 = vsub.s32 %v101_v28, %v578_v32 }
  0x13   :  { %v66_v16 = vadd.f32 %v550_v13, %v548_v12  ;;  %v562_v19 = vld [vmem:[#allocation2 + $0x78] sm:$0xff]  ;;  %v566_v21 = vld [vmem:[#allocation2 + $0x68] sm:$0xff]  ;;  %v83_v26 = vld [vmem:[%s622_s1] sm:$0xff] }
  0x14   :  { %v72_v22 = vadd.f32 %v562_v19, %v560_v18  ;;  %v69_v23 = vadd.f32 %v566_v21, %v564_v20  ;;  %v84_v25 = vld [vmem:[%s622_s1 + $0x8] sm:$0xff]  ;;  %v109_v35 = vsub.s32 %v106_v31, %v578_v32  ;;  %v220_v3 = vld [vmem:[%s624_s3] sm:$0x3] }
  0x15   :  { %61 = vadd.xlane.f32.xlu1 %v60_v10  ;;  %417 = vmatpush3.msra.mxu0 %v84_v25  ;;  %v405_v7 = vld [vmem:[%s623_s2] ss:$0 sm:$0xff]  ;;  %s487_s2 = smov [#allocation5]  }
  0x16   :  { %55 = vadd.xlane.f32.xlu0 %v54_v11  ;;  %418 = vmatprep.subr.mxu0 %v485_v24  ;;  %s393_s3 = sshll.u32 %s487_s2, 4  ;;  %s394_s3 = int_to_ptr.vmem [resolvable:$true] %s393_s3 }
  0x17   :  { %419 = vmatpush3.msra.mxu0 %v83_v26  ;;  %424 = vmatpush3.msk.msra.mxu1 %vm232_vm6, %v220_v3  ;;  %p463_p6 = scmp.lt.s32.totalorder %s394_s3, %s394_s3 }
  0x19   :  { %67 = vadd.xlane.f32.xlu1 %v66_v16 }
  0x1a   :  { %64 = vadd.xlane.f32.xlu0 %v63_v17 }
  0x1d   :  { %73 = vadd.xlane.f32.xlu1 %v72_v22  ;;  %v407_v22 = vld [vmem:[%s625_s4] ss:$0 sm:$0xff]  ;;  %s458_s4 = scalar_lea.vmem %s394_s3, 2048 }
  0x1e   :  { %70 = vadd.xlane.f32.xlu0 %v69_v23  ;;  %p459_p5 = scmp.ne.s32.totalorder %s394_s3, %s458_s4  ;;  %p464_p7 = scmp.lt.s32.totalorder %s458_s4, %s458_s4 }
  0x20   :  { %p465_p8 = por %p464_p7, %p463_p6 }
  0x22   :  { %p466_p9 = pnand %p465_p8, %p459_p5 }
  0x9a   :  { %v59_v29 = vpop.xlane.xlu1 %58 }
  0x9b   :  { %v53_v30 = vpop.xlane.xlu0 %52  ;;  %v77_v39 = vmul.f32 0.00390625, %v59_v29  ;;  %v314_v29 = vsub.s32 0, %v578_v32 }
  0x9c   :  { %v75_v40 = vmul.f32 0.00390625, %v53_v30 }
  0x9d   :  { %v116_v48 = vrot.slane %v77_v39, %v104_v38 }
  0x9e   :  { %v62_v33 = vpop.xlane.xlu1 %61  ;;  %v105_v49 = vrot.slane %v75_v40, %v104_v38 }
  0x9f   :  { %v56_v34 = vpop.xlane.xlu0 %55  ;;  %v78_v36 = vmul.f32 0.00390625, %v62_v33  ;;  %v325_v33 = vsub.s32 1, %v578_v32 }
  0xa0   :  { %v76_v37 = vmul.f32 0.00390625, %v56_v34  ;;  %v336_v34 = vsub.s32 2, %v578_v32 }
  0xa1   :  { %v120_v44 = vrot.slane %v78_v36, %v109_v35 }
  0xa2   :  { %v68_v41 = vpop.xlane.xlu1 %67  ;;  %v110_v45 = vrot.slane %v76_v37, %v109_v35  ;;  %v347_v37 = vsub.s32 3, %v578_v32 }
  0xa3   :  { %v80_v42 = vmul.f32 0.00390625, %v68_v41  ;;  %v65_v43 = vpop.xlane.xlu0 %64  ;;  %v121_v54 = vsel %vm111_vm1, %v120_v44, %v116_v48 }
  0xa4   :  { %v79_v46 = vmul.f32 0.00390625, %v65_v43  ;;  %v112_v55 = vsel %vm111_vm1, %v110_v45, %v105_v49 }
  0xa5   :  { %v129_v47 = vrot.slane %v80_v42, %v109_v35  ;;  %v141_v60 = vsel %vm140_vm2, %v121_v54, %v112_v55 }
  0xa6   :  { %v125_v50 = vrot.slane %v79_v46, %v104_v38  ;;  %v74_v51 = vpop.xlane.xlu1 %73 }
  0xa7   :  { %v82_v52 = vmul.f32 0.00390625, %v74_v51  ;;  %v71_v53 = vpop.xlane.xlu0 %70 }
  0xa8   :  { %v81_v56 = vmul.f32 0.00390625, %v71_v53  ;;  %v130_v57 = vsel %vm111_vm1, %v129_v47, %v125_v50 }
  0xa9   :  { %v138_v58 = vrot.slane %v82_v52, %v109_v35  ;;  %v143_v62 = vsel %vm142_vm3, %v130_v57, %v141_v60 }
  0xaa   :  { %v134_v59 = vrot.slane %v81_v56, %v104_v38 }
  0xac   :  { %v139_v61 = vsel %vm111_vm1, %v138_v58, %v134_v59 }
  0xad   :  { %v145_v63 = vsel %vm144_vm4, %v139_v61, %v143_v62 }
  0xae   :  { %421 = vmatmul.mubr.msk.f32.vlgmr.msra.gmra.mxu0 %vm146_vm5, %v145_v63 }
 0x16e   :  { %v215_v10 = vpop.f32.mrf.mxu0 }
 0x16f   :  { %v216_v11 = vadd.f32 %v405_v7, %v215_v10 }
 0x170   :  { %v422_v16 = vpop.f32.mrf.mxu0 }
 0x171   :  { %v219_v17 = vmax.f32 %v216_v11, 0.0 }
 0x173   :  { %426 = vmatmul.mubr.msk.f32.vlgmr.msra.gmra.mxu1 %vm228_vm7, %v219_v17 }
 0x233   :  { %v302_v23 = vpop.f32.mrf.mxu1 }
 0x234   :  { %v303_v24 = vadd.f32 %v407_v22, %v302_v23 }
 0x235   :  { %v427_v25 = vpop.f32.mrf.mxu1 }
 0x236   :  { %v410_v26 = vmul.f32 -1.442695, %v303_v24 }
 0x238   :  { %434 = vpow2.f32 %v410_v26 }
 0x245   :  { %v435_v27 = vpop.eup %434 }
 0x246   :  { %v309_v28 = vadd.f32 1.0, %v435_v27 }
 0x248   :  { %436 = vrcp.f32 %v309_v28 }
 0x255   :  { %v437_v30 = vpop.eup %436 }
 0x256   :  { %v315_v31 = vrot.slane %v437_v30, %v314_v29  ;;  %v326_v35 = vrot.slane %v437_v30, %v325_v33  ;;  %v337_v36 = vrot.slane %v437_v30, %v336_v34  ;;  %v348_v38 = vrot.slane %v437_v30, %v347_v37 }
 0x258   :  { %321 = vbcast.lane.b32.xlu1 %v315_v31, 264  ;;  %317 = vbcast.lane.b32.xlu0 %v315_v31, 256 }
 0x25c   :  { %328 = vbcast.lane.b32.xlu1 %v326_v35, 256  ;;  %339 = vbcast.lane.b32.xlu0 %v337_v36, 256 }
 0x260   :  { %332 = vbcast.lane.b32.xlu1 %v326_v35, 264  ;;  %350 = vbcast.lane.b32.xlu0 %v348_v38, 256 }
 0x264   :  { %343 = vbcast.lane.b32.xlu1 %v337_v36, 264 }
 0x268   :  { %354 = vbcast.lane.b32.xlu1 %v348_v38, 264 }
 0x2ca   :  { %v322_v39 = vpop.permute.xlu1 %321  ;;  %v318_v40 = vpop.permute.xlu0 %317 }
 0x2cb   :  { %v358_v41 = vmul.f32 %v322_v39, %v540_v8  ;;  %v359_v42 = vmul.f32 %v322_v39, %v542_v9  ;;  %v356_v43 = vmul.f32 %v318_v40, %v528_v2  ;;  %v357_v44 = vmul.f32 %v318_v40, %v532_v4 }
 0x2cd   :  { %374 = vst [vmem:[#allocation5 + $0x10] sm:$0xff] %v358_v41  ;;  %375 = vst [vmem:[#allocation5 + $0x18] sm:$0xff] %v359_v42 }
 0x2ce   :  { %372 = vst [vmem:[#allocation5] sm:$0xff] %v356_v43  ;;  %373 = vst [vmem:[#allocation5 + $0x8] sm:$0xff] %v357_v44  ;;  %v329_v32 = vpop.permute.xlu1 %328  ;;  %v340_v45 = vpop.permute.xlu0 %339 }
 0x2cf   :  { %v360_v46 = vmul.f32 %v329_v32, %v524_v0  ;;  %v361_v47 = vmul.f32 %v329_v32, %v526_v1  ;;  %v364_v48 = vmul.f32 %v340_v45, %v552_v14  ;;  %v365_v8 = vmul.f32 %v340_v45, %v554_v15 }
 0x2d1   :  { %376 = vst [vmem:[#allocation5 + $0x20] sm:$0xff] %v360_v46  ;;  %377 = vst [vmem:[#allocation5 + $0x28] sm:$0xff] %v361_v47 }
 0x2d2   :  { %380 = vst [vmem:[#allocation5 + $0x40] sm:$0xff] %v364_v48  ;;  %381 = vst [vmem:[#allocation5 + $0x48] sm:$0xff] %v365_v8  ;;  %v333_v2 = vpop.permute.xlu1 %332  ;;  %v351_v4 = vpop.permute.xlu0 %350 }
 0x2d3   :  { %v362_v9 = vmul.f32 %v333_v2, %v534_v5  ;;  %v363_v49 = vmul.f32 %v333_v2, %v536_v6  ;;  %v368_v50 = vmul.f32 %v351_v4, %v564_v20  ;;  %v369_v0 = vmul.f32 %v351_v4, %v566_v21 }
 0x2d5   :  { %378 = vst [vmem:[#allocation5 + $0x30] sm:$0xff] %v362_v9  ;;  %379 = vst [vmem:[#allocation5 + $0x38] sm:$0xff] %v363_v49 }
 0x2d6   :  { %384 = vst [vmem:[#allocation5 + $0x60] sm:$0xff] %v368_v50  ;;  %385 = vst [vmem:[#allocation5 + $0x68] sm:$0xff] %v369_v0  ;;  %v344_v1 = vpop.permute.xlu1 %343 }
 0x2d7   :  { %v366_v14 = vmul.f32 %v344_v1, %v548_v12  ;;  %v367_v15 = vmul.f32 %v344_v1, %v550_v13 }
 0x2d9   :  { %382 = vst [vmem:[#allocation5 + $0x50] sm:$0xff] %v366_v14  ;;  %383 = vst [vmem:[#allocation5 + $0x58] sm:$0xff] %v367_v15 }
 0x2da   :  { %v355_v5 = vpop.permute.xlu1 %354 }
 0x2db   :  { %v370_v6 = vmul.f32 %v355_v5, %v560_v18  ;;  %v371_v20 = vmul.f32 %v355_v5, %v562_v19 }
 0x2dd   :  { %386 = vst [vmem:[#allocation5 + $0x70] sm:$0xff] %v370_v6  ;;  %387 = vst [vmem:[#allocation5 + $0x78] sm:$0xff] %v371_v20 }
 0x2de   :  { %469 = shalt.err (!%p466_p9)
}
 0x2df   :  { %399 = dma.vmem_to_hbm [thread:$0]  %s394_s3, 2048, %s626_s5, [#allocation4], %s483_s21, %s483_s21, %s484_s22  }
 0x2e0   :  { %480 = dma.done.wait [#allocation4], 2048  }
 0x2e1   :  { %481 = vsyncadd [#allocation4], 4294965248 }
 0x2e2   :  { %403 = vsyncpa [#allocation3], 1 }
 0x2e3   :  { %404 = vsyncpa [#allocation4], 1 }

</bundles_post_ra>
